<compile_context>
chip_gen: v6e
topology: v6e:2x2x1
jax: 0.10.0
libtpu: 0.0.40
codegen_flags: <defaults>
</compile_context>

<pallas_src>
import jax
import jax.numpy as jnp
from jax.experimental import pallas as pl
from jax.experimental.pallas import tpu as pltpu


_TARGET_BLOCK_BYTES = 2 * 1024 * 1024  # ~2 MiB per block


def _sublane_multiple(dtype) -> int:
    itemsize = jnp.dtype(dtype).itemsize
    if itemsize >= 4:
        return 8
    if itemsize == 2:
        return 16
    return 32


def _pick_cols(n: int) -> int:
    # Widest lane-dense width (multiple of 128) that divides n; otherwise fall
    # back to 1024 and pad only the small flat tail.
    for c in (1024, 512, 256, 128):
        if n % c == 0:
            return c
    return 1024


def _make_sine_kernel(w0: float):
    w0 = float(w0)

    def _kernel(x_ref, o_ref):
        # Pure VPU/EUP elementwise work; compute in f32, cast on store.
        x = x_ref[...].astype(jnp.float32)
        o_ref[...] = jnp.sin(w0 * x).astype(o_ref.dtype)

    return _kernel


def sine(x: jax.Array, w0: float = 1.0) -> jax.Array:
    """Apply y = sin(w0 * x) elementwise with a Pallas TPU kernel."""
    if x.size == 0:
        return x

    orig_shape = x.shape
    dtype = x.dtype
    n = x.size

    # Flatten to a lane-dense 2D slab.
    cols = _pick_cols(n)
    padded_n = ((n + cols - 1) // cols) * cols
    flat = x.reshape(-1)
    if padded_n != n:
        flat = jnp.pad(flat, (0, padded_n - n))
    rows = padded_n // cols
    x2 = flat.reshape(rows, cols)

    # Block sizing by bytes; dtype-aware sublane multiple.
    sub = _sublane_multiple(dtype)
    itemsize = jnp.dtype(dtype).itemsize
    tile_r = max(sub, (_TARGET_BLOCK_BYTES // (cols * itemsize)) // sub * sub)
    if rows <= tile_r:
        tile_r = rows  # block spans the full sublane extent (always legal)
    grid_r = pl.cdiv(rows, tile_r)

    # v7x has 2 TensorCores: ensure >=2 parallel blocks when splittable.
    if grid_r == 1 and rows >= 2 * sub:
        half = -(-rows // 2)
        tile_r = ((half + sub - 1) // sub) * sub
        grid_r = pl.cdiv(rows, tile_r)

    out = pl.pallas_call(
        _make_sine_kernel(w0),
        out_shape=jax.ShapeDtypeStruct((rows, cols), dtype),
        grid=(grid_r,),
        in_specs=[pl.BlockSpec((tile_r, cols), lambda i: (i, 0))],
        out_specs=pl.BlockSpec((tile_r, cols), lambda i: (i, 0)),
        compiler_params=pltpu.CompilerParams(
            dimension_semantics=("parallel",),
            vmem_limit_bytes=32 * 1024 * 1024,
        ),
    )(x2)

    if padded_n != n:
        return out.reshape(-1)[:n].reshape(orig_shape)
    return out.reshape(orig_shape)


if __name__ == "__main__":
    key = jax.random.PRNGKey(0)
    w0 = 30.0  # common SIREN first-layer omega_0

    # 1) SIREN-ish activation input: (batch=2, seq=8, hidden=32), f32, aligned.
    x1 = jax.random.normal(key, (2, 8, 32), dtype=jnp.float32)
    y1 = jax.block_until_ready(sine(x1, w0=w0))
    ref1 = jnp.sin(w0 * x1)
    assert y1.shape == x1.shape and y1.dtype == x1.dtype
    assert jnp.allclose(y1, ref1, atol=1e-5, rtol=1e-5)

    # 2) Awkward shape that exercises the flat-tail padding path.
    x2 = jax.random.normal(jax.random.PRNGKey(1), (3, 5, 7), dtype=jnp.float32)
    y2 = jax.block_until_ready(sine(x2, w0=w0))
    ref2 = jnp.sin(w0 * x2)
    assert y2.shape == x2.shape and y2.dtype == x2.dtype
    assert jnp.allclose(y2, ref2, atol=1e-5, rtol=1e-5)

    # 3) bf16 input: bf16 I/O, f32 compute inside the kernel.
    x3 = jax.random.normal(jax.random.PRNGKey(2), (2, 8, 32)).astype(jnp.bfloat16)
    y3 = jax.block_until_ready(sine(x3, w0=w0))
    ref3 = jnp.sin(w0 * x3.astype(jnp.float32)).astype(jnp.bfloat16)
    assert y3.shape == x3.shape and y3.dtype == x3.dtype
    assert jnp.allclose(
        y3.astype(jnp.float32), ref3.astype(jnp.float32), atol=2e-2, rtol=2e-2
    )

    # 4) Slightly bigger aligned slab that exercises grid > 1 (both-TC split).
    x4 = jax.random.normal(jax.random.PRNGKey(3), (16, 1024), dtype=jnp.float32)
    y4 = jax.block_until_ready(sine(x4, w0=w0))
    ref4 = jnp.sin(w0 * x4)
    assert y4.shape == x4.shape and y4.dtype == x4.dtype
    assert jnp.allclose(y4, ref4, atol=1e-5, rtol=1e-5)

    print("KERNEL_OK")
</pallas_src>

<mosaic_0001>
module attributes {stable_mosaic.version = 11 : i64} {
  func.func @_kernel(%arg0: i32, %arg1: memref<1x512xf32, #tpu.memory_space<vmem>>, %arg2: memref<1x512xf32, #tpu.memory_space<vmem>>) attributes {dimension_semantics = [#tpu.dimension_semantics<parallel>], iteration_bounds = array<i64: 1>, scalar_prefetch = 0 : i64, scratch_operands = 0 : i64, tpu.core_type = #tpu.core_type<tc>, window_params = [{transform_indices = @transform_0, window_bounds = array<i64: 1, 512>}, {transform_indices = @transform_1, window_bounds = array<i64: 1, 512>}]} {
    %c0 = arith.constant 0 : index
    %c0_0 = arith.constant 0 : index
    %0 = vector.load %arg1[%c0, %c0_0] : memref<1x512xf32, #tpu.memory_space<vmem>>, vector<1x512xf32>
    %cst = arith.constant 3.000000e+01 : f32
    %1 = vector.broadcast %cst : f32 to vector<1x512xf32>
    %2 = arith.mulf %1, %0 : vector<1x512xf32>
    %3 = math.sin %2 : vector<1x512xf32>
    %c0_1 = arith.constant 0 : index
    %c0_2 = arith.constant 0 : index
    %4 = vector.load %arg2[%c0_1, %c0_2] : memref<1x512xf32, #tpu.memory_space<vmem>>, vector<1x512xf32>
    tpu.vector_store %arg2[%c0_1, %c0_2], %3 {strides = array<i32>} : memref<1x512xf32, #tpu.memory_space<vmem>>, vector<1x512xf32>,
    return
  }
  func.func @transform_0(%arg0: i32) -> (i32, i32) {
    %c0_i32 = arith.constant 0 : i32
    %c0_i32_0 = arith.constant 0 : i32
    return %arg0, %c0_i32 : i32, i32
  }
  func.func @transform_1(%arg0: i32) -> (i32, i32) {
    %c0_i32 = arith.constant 0 : i32
    %c0_i32_0 = arith.constant 0 : i32
    return %arg0, %c0_i32 : i32, i32
  }
}

</mosaic_0001>

<bundles_post_ra>
// kernel: tpu_custom_call.1
= control target key start
LH: loop header
LB: loop body
LE: loop exit
PB: predicated region body
PF: predicated region fallthrough
CT: control target
= control target key end

     0   :  { %6 = vsyncpa [#allocation3], 0  ;;  %s256_s0 = inlined_call_operand.hbm [shape: f32[1,512], index: 0, kind: input, shape index: {}]   ;;  %s257_s1 = inlined_call_operand.hbm [shape: f32[1,512], index: 1, kind: output, shape index: {}]  }
   0x1   :  { %7 = vsyncpa [#allocation4], 0  ;;  %s211_s6 = smov [#allocation2]  }
   0x2   :  { %s14_s7 = sshll.u32 %s211_s6, 4  ;;  %s15_s7 = int_to_ptr.vmem [resolvable:$true] %s14_s7 }
   0x3   :  { %s175_s8 = scalar_lea.vmem %s15_s7, 64  ;;  %p180_p1 = scmp.lt.s32.totalorder %s15_s7, %s15_s7 }
   0x4   :  { %p176_p0 = scmp.ne.s32.totalorder %s15_s7, %s175_s8  ;;  %p181_p2 = scmp.lt.s32.totalorder %s175_s8, %s175_s8 }
   0x6   :  { %p182_p3 = por %p181_p2, %p180_p1 }
   0x8   :  { %p183_p4 = pnand %p182_p3, %p176_p0 }
   0xa   :  { %186 = shalt.err (!%p183_p4)
}
   0xb   :  { %17 = dma.hbm_to_vmem [thread:$0]  %s256_s0, 64, %s15_s7, [#allocation3]  }
   0xc   :  { %207 = dma.done.wait [#allocation3], 64  }
   0xd   :  { %208 = vsyncadd [#allocation3], 4294967232  ;;  %v21_v0 = vld [vmem:[#allocation2] sm:$0xf]  ;;  %v212_v13 = vmov 683565275  }
   0xe   :  { %v232_v1 = vmul.f32 30.0, %v21_v0  ;;  %v213_v15 = vmov 2475754826   ;;  %v214_v17 = vmov 2131351028   ;;  %s218_s0 = smov [#allocation5]  }
   0xf   :  { %v215_v19 = vmov 2102212464   ;;  %v216_v21 = vmov 920167782   ;;  %v217_v28 = vmov 1326507024  }
  0x10   :  { %v26_v2 = vand.u32 2139095040, %v232_v1  ;;  %v23_v4 = vand.u32 2147483647, %v232_v1  ;;  %vm25_vm7 = vcmp.lt.s32.totalorder %v232_v1, 0  ;;  %s138_s11 = sshll.u32 %s218_s0, 4  ;;  %vm115_vm12 = vweird.f32 %v232_v1  ;;  %s139_s11 = int_to_ptr.vmem [resolvable:$true] %s138_s11 }
  0x11   :  { %s187_s12 = scalar_lea.vmem %s139_s11, 64  ;;  %p192_p6 = scmp.lt.s32.totalorder %s139_s11, %s139_s11 }
  0x12   :  { %v27_v3 = vshrl.u32 %v26_v2, 23  ;;  %v30_v7 = vand.u32 8388607, %v23_v4  ;;  %vm24_vm8 = vcmp.le.f32.partialorder %v23_v4, 0.7853982  ;;  %p188_p5 = scmp.ne.s32.totalorder %s139_s11, %s187_s12  ;;  %p193_p7 = scmp.lt.s32.totalorder %s187_s12, %s187_s12 }
  0x14   :  { %v147_v5 = vadd.s32 4294967169, %v27_v3  ;;  %v31_v10 = vor.u32 8388608, %v30_v7  ;;  %p194_p8 = por %p193_p7, %p192_p6 }
  0x16   :  { %v33_v6 = vadd.s32 1, %v147_v5  ;;  %v71_v30 = vshll.u32 %v31_v10, 8  ;;  %p195_p9 = pnand %p194_p8, %p188_p5 }
  0x18   :  { %vm34_vm0 = vcmp.gt.s32.totalorder %v33_v6, 0 }
  0x19   :  { %v35_v8 = vsel %vm34_vm0, %v33_v6, 0 }
  0x1a   :  { %v37_v9 = vand.u32 31, %v35_v8  ;;  %v36_v11 = vshrl.u32 %v35_v8, 5 }
  0x1c   :  { %v38_v12 = vsub.s32 32, %v37_v9  ;;  %v40_v14 = vshll.u32 %v212_v13, %v37_v9  ;;  %v43_v16 = vshll.u32 %v213_v15, %v37_v9  ;;  %v46_v18 = vshll.u32 %v214_v17, %v37_v9 }
  0x1d   :  { %v49_v20 = vshll.u32 %v215_v19, %v37_v9  ;;  %v52_v22 = vshll.u32 %v216_v21, %v37_v9  ;;  %vm55_vm1 = vcmp.lt.s32.totalorder %v36_v11, 1  ;;  %vm58_vm2 = vcmp.lt.s32.totalorder %v36_v11, 4 }
  0x1e   :  { %v39_v23 = vshrl.u32 %v212_v13, %v38_v12  ;;  %v41_v24 = vshrl.u32 %v213_v15, %v38_v12  ;;  %v44_v25 = vshrl.u32 %v214_v17, %v38_v12  ;;  %v47_v26 = vshrl.u32 %v215_v19, %v38_v12 }
  0x1f   :  { %v50_v27 = vshrl.u32 %v216_v21, %v38_v12  ;;  %v53_v29 = vshrl.u32 %v217_v28, %v38_v12  ;;  %vm56_vm3 = vcmp.lt.s32.totalorder %v36_v11, 2  ;;  %vm57_vm4 = vcmp.lt.s32.totalorder %v36_v11, 3 }
  0x20   :  { %v42_v31 = vor.u32 %v41_v24, %v40_v14  ;;  %v45_v32 = vor.u32 %v44_v25, %v43_v16  ;;  %v48_v33 = vor.u32 %v47_v26, %v46_v18  ;;  %v127_v24 = vlaneseq }
  0x21   :  { %v51_v34 = vor.u32 %v50_v27, %v49_v20  ;;  %v54_v35 = vor.u32 %v53_v29, %v52_v22 }
  0x22   :  { %v59_v36 = vsel %vm55_vm1, %v39_v23, %v42_v31  ;;  %v60_v37 = vsel %vm58_vm2, %v48_v33, 2102212464  ;;  %v63_v38 = vsel %vm55_vm1, %v42_v31, %v45_v32  ;;  %v67_v39 = vsel %vm55_vm1, %v45_v32, %v48_v33 }
  0x23   :  { %v61_v40 = vsel %vm57_vm4, %v45_v32, %v60_v37  ;;  %v64_v41 = vsel %vm58_vm2, %v51_v34, 920167782  ;;  %v68_v42 = vsel %vm58_vm2, %v54_v35, 1326507024  ;;  %vm129_vm13 = vcmp.lt.s32.totalorder %v127_v24, 512 }
  0x24   :  { %v65_v43 = vsel %vm57_vm4, %v48_v33, %v64_v41  ;;  %v69_v44 = vsel %vm57_vm4, %v51_v34, %v68_v42  ;;  %v62_v45 = vsel %vm56_vm3, %v59_v36, %v61_v40 }
  0x25   :  { %v66_v46 = vsel %vm56_vm3, %v63_v38, %v65_v43  ;;  %v70_v47 = vsel %vm56_vm3, %v67_v39, %v69_v44  ;;  %v78_v52 = vmul.u32 %v71_v30, %v62_v45 }
  0x26   :  { %v238_v48 = vmul.u32.u64.low %v71_v30, %v70_v47  ;;  %v239_v49 = vmul.u32.u64.high %v71_v30, %v70_v47, %v238_v48  ;;  %v241_v50 = vmul.u32.u64.low %v71_v30, %v66_v46  ;;  %v242_v51 = vmul.u32.u64.high %v71_v30, %v66_v46, %v241_v50 }
  0x28   :  { %vm80_vm5 = vc.u32 %v239_v49, %v241_v50  ;;  %v81_v53 = vadd.s32 1, %v242_v51  ;;  %v79_v0 = vadd.s32 %v241_v50, %v239_v49 }
  0x2a   :  { %v82_v54 = vsel %vm80_vm5, %v81_v53, %v242_v51 }
  0x2b   :  { %v83_v55 = vadd.s32 %v82_v54, %v78_v52 }
  0x2d   :  { %v84_v56 = vadd.s32 536870912, %v83_v55 }
  0x2f   :  { %v85_v57 = vshrl.u32 %v84_v56, 30 }
  0x31   :  { %v86_v58 = vshll.u32 %v85_v57, 30  ;;  %v109_v15 = vsub.s32 4, %v85_v57 }
  0x33   :  { %v87_v59 = vsub.s32 %v83_v55, %v86_v58  ;;  %v110_v18 = vsel %vm25_vm7, %v109_v15, %v85_v57 }
  0x34   :  { %v112_v20 = vsel %vm24_vm8, 0, %v110_v18 }
  0x35   :  { %v89_v60 = vsub.s32 0, %v87_v59  ;;  %v116_v21 = vadd.s32 3, %v112_v20 }
  0x37   :  { %v148_v61 = vmin.u32 %v89_v60, %v87_v59  ;;  %v117_v22 = vand.u32 3, %v116_v21 }
  0x39   :  { %v91_v62 = vclz %v148_v61  ;;  %vm122_vm9 = vcmp.eq.s32.totalorder %v117_v22, 2  ;;  %vm119_vm10 = vcmp.eq.s32.totalorder %v117_v22, 0  ;;  %vm118_vm11 = vcmp.lt.s32.totalorder %v117_v22, 2 }
  0x3b   :  { %v149_v63 = vadd.s32 4294967294, %v91_v62 }
  0x3d   :  { %vm150_vm6 = vcmp.lt.s32.totalorder %v149_v63, 0 }
  0x3e   :  { %v94_v2 = vsel %vm150_vm6, 0, %v149_v63 }
  0x3f   :  { %v95_v3 = vsub.s32 32, %v94_v2  ;;  %v96_v5 = vshll.u32 %v87_v59, %v94_v2  ;;  %v99_v6 = vsub.s32 4294967266, %v94_v2 }
  0x41   :  { %v97_v7 = vshrl.u32 %v79_v0, %v95_v3  ;;  %v100_v8 = vadd.s32 127, %v99_v6 }
  0x43   :  { %v98_v9 = vor.u32 %v97_v7, %v96_v5  ;;  %v101_v10 = vshll.u32 %v100_v8, 23 }
  0x45   :  { %v102_v11 = vor.u32 4788187, %v101_v10  ;;  %v105_v12 = vcvt.s32.f32 %v98_v9 }
  0x47   :  { %v103_v13 = vand.u32 2147483647, %v102_v11 }
  0x49   :  { %v106_v14 = vmul.f32 %v105_v12, %v103_v13 }
  0x4b   :  { %v107_v16 = vxor.u32 2147483648, %v106_v14 }
  0x4d   :  { %v108_v17 = vsel %vm25_vm7, %v107_v16, %v106_v14 }
  0x4e   :  { %v111_v19 = vsel %vm24_vm8, %v232_v1, %v108_v17 }
  0x4f   :  { %163 = vcosq.f32 %v111_v19 }
  0x50   :  { %165 = vsinq.f32 %v111_v19 }
  0x5c   :  { %v164_v23 = vpop.eup %163 }
  0x5d   :  { %v166_v25 = vpop.eup %165  ;;  %v123_v26 = vxor.u32 2147483648, %v164_v23 }
  0x5e   :  { %v120_v27 = vxor.u32 2147483648, %v166_v25 }
  0x5f   :  { %v124_v4 = vsel %vm122_vm9, %v123_v26, %v166_v25 }
  0x60   :  { %v121_v28 = vsel %vm119_vm10, %v164_v23, %v120_v27 }
  0x61   :  { %v125_v29 = vsel %vm118_vm11, %v121_v28, %v124_v4 }
  0x62   :  { %v126_v30 = vsel %vm115_vm12, nan, %v125_v29 }
  0x63   :  { %131 = vst.msk [vmem:[#allocation5] sm:$0xf] %vm129_vm13, %v126_v30 }
  0x64   :  { %198 = shalt.err (!%p195_p9)
}
  0x65   :  { %141 = dma.vmem_to_hbm [thread:$0]  %s139_s11, 64, %s257_s1, [#allocation4]  }
  0x66   :  { %209 = dma.done.wait [#allocation4], 64  }
  0x67   :  { %210 = vsyncadd [#allocation4], 4294967232 }
  0x68   :  { %145 = vsyncpa [#allocation3], 1 }
  0x69   :  { %146 = vsyncpa [#allocation4], 1 }

</bundles_post_ra>
